<compile_context>
chip_gen: v7x
topology: tpu7x:2x2x1
jax: 0.10.0
libtpu: 0.0.40
codegen_flags: <defaults>
</compile_context>

<pallas_src>
import functools

import jax
import jax.numpy as jnp
from jax.experimental import pallas as pl
from jax.experimental.pallas import tpu as pltpu

LN_EPS = 1e-5  # nn.LayerNorm default


def _round_up(a, b):
    return (a + b - 1) // b * b


def _vmem_limit_bytes():
    """Per-generation scoped-VMEM limit: min(48 MiB, 65% of physical VMEM)."""
    default = 48 * 1024 * 1024
    try:
        cap = pltpu.get_tpu_info().vmem_capacity_bytes
        return min(default, int(0.65 * cap))
    except Exception:  # interpret mode / older runtime
        return default


def _choose_tk_ff(d_model, d_ff, w_itemsize, budget_bytes):
    """d_ff chunk size: full residency if both weights fit the budget, else the
    largest 128-aligned divisor of d_ff whose double-buffered chunk pair fits."""
    if 2 * d_model * d_ff * w_itemsize <= budget_bytes:
        return d_ff
    for tk in (4096, 2048, 1024, 512, 256, 128):
        if d_ff % tk == 0 and 2 * 2 * d_model * tk * w_itemsize <= budget_bytes:
            return tk
    for tk in (128, 256, 512, 1024, 2048, 4096):  # best effort: smallest divisor
        if d_ff % tk == 0:
            return tk
    return d_ff  # odd d_ff: fall back to full residency


def _vmem_fits(tr, tk_ff, d_model, d_ff, x_itemsize, w_itemsize, limit):
    resident = tk_ff == d_ff
    x_buf = 2 * tr * d_model * x_itemsize          # x tile, double-buffered
    o_buf = 2 * tr * d_model * x_itemsize          # out tile, double-buffered
    acc = tr * d_model * 4                         # f32 accumulator scratch
    xn = tr * d_model * w_itemsize                 # normalized-x scratch
    n_wbuf = 1 if resident else 2                  # single-buffer when resident
    w_buf = n_wbuf * 2 * d_model * tk_ff * w_itemsize
    misc = 4 * (3 * d_model + tk_ff) * 2 + (1 << 20)   # biases + internal slack
    return x_buf + o_buf + acc + xn + w_buf + misc <= int(0.9 * limit)


def _ffn_block_kernel(x_ref, gamma_ref, beta_ref, w1_ref, b1_ref, w2_ref,
                      b2_ref, o_ref, xn_ref, acc_ref):
    k = pl.program_id(1)

    @pl.when(k == 0)
    def _():
        # LayerNorm over the last dim (two-pass variance for stability) and
        # seed the f32 accumulator with the residual (pre-LN input).
        x = x_ref[...].astype(jnp.float32)
        inv_d = 1.0 / x.shape[-1]
        mean = jnp.sum(x, axis=-1, keepdims=True) * inv_d
        cent = x - mean
        var = jnp.sum(cent * cent, axis=-1, keepdims=True) * inv_d
        xn = cent * jax.lax.rsqrt(var + LN_EPS)
        xn = xn * gamma_ref[...] + beta_ref[...]
        xn_ref[...] = xn.astype(xn_ref.dtype)
        acc_ref[...] = x

    # One d_ff chunk: (d_model -> tk_ff) + bias + ReLU, then (tk_ff -> d_model),
    # accumulated in f32 on top of the residual.  Never materializes the full
    # (TR, d_ff) hidden activation when d_ff is chunked.
    h = jnp.dot(xn_ref[...], w1_ref[...], preferred_element_type=jnp.float32)
    h = jnp.maximum(h + b1_ref[...], 0.0)
    acc_ref[...] += jnp.dot(h.astype(w2_ref.dtype), w2_ref[...],
                            preferred_element_type=jnp.float32)

    @pl.when(k == pl.num_programs(1) - 1)
    def _():
        # dropout layers are identity in eval mode.
        o_ref[...] = (acc_ref[...] + b2_ref[...]).astype(o_ref.dtype)


@functools.partial(jax.jit, static_argnames=("tile_rows",))
def feed_forward_block(x, gamma, beta, w1, b1, w2, b2, *, tile_rows=512):
    """x: (batch, seq, d_model) -> (batch, seq, d_model).

    w1: (d_model, d_ff), w2: (d_ff, d_model) ("math-major", i.e. nn.Linear
    weights transposed).  Pass weights already cast to the desired matmul
    dtype (bf16 recommended) -- the kernel consumes them as-is.
    """
    batch, seq, d_model = x.shape
    d_ff = w1.shape[1]
    n_rows = batch * seq

    x_itemsize = jnp.dtype(x.dtype).itemsize
    w_itemsize = jnp.dtype(w1.dtype).itemsize

    vmem_limit = _vmem_limit_bytes()
    tk_ff = _choose_tk_ff(d_model, d_ff, w_itemsize, int(0.5 * vmem_limit))
    weights_resident = tk_ff == d_ff

    # Row tile: large for MXU occupancy / step-overhead amortization, clamped
    # for small inputs, multiple of 16 (bf16 sublane packing of the matmul
    # operand), shrunk until the working set fits scoped VMEM.
    tr = _round_up(min(tile_rows, _round_up(n_rows, 16)), 16)
    while tr > 16 and not _vmem_fits(tr, tk_ff, d_model, d_ff,
                                     x_itemsize, w_itemsize, vmem_limit):
        tr = _round_up(tr // 2, 16)

    grid = (pl.cdiv(n_rows, tr), d_ff // tk_ff)

    x2 = x.reshape(n_rows, d_model)
    # 1-D params as (1, d) so they map onto (sublane, lane); tiny f32 casts.
    gamma2 = gamma.reshape(1, d_model).astype(jnp.float32)
    beta2 = beta.reshape(1, d_model).astype(jnp.float32)
    b1_2 = b1.reshape(1, d_ff).astype(jnp.float32)
    b2_2 = b2.reshape(1, d_model).astype(jnp.float32)

    def spec(shape, index_map, single_buffer=False):
        if single_buffer:
            # Grid-invariant operand: single-buffer to halve its VMEM footprint.
            return pl.BlockSpec(shape, index_map, pipeline_mode=pl.Buffered(1))
        return pl.BlockSpec(shape, index_map)

    row_spec = spec((tr, d_model), lambda i, k: (i, 0))

    in_specs = [
        row_spec,                                                      # x
        spec((1, d_model), lambda i, k: (0, 0), single_buffer=True),   # gamma
        spec((1, d_model), lambda i, k: (0, 0), single_buffer=True),   # beta
        spec((d_model, tk_ff), lambda i, k: (0, k),
             single_buffer=weights_resident),                          # w1
        spec((1, tk_ff), lambda i, k: (0, k),
             single_buffer=weights_resident),                          # b1
        spec((tk_ff, d_model), lambda i, k: (k, 0),
             single_buffer=weights_resident),                          # w2
        spec((1, d_model), lambda i, k: (0, 0), single_buffer=True),   # b2
    ]

    w_pass_bytes = 2 * d_model * d_ff * w_itemsize
    if not weights_resident:
        w_pass_bytes *= grid[0]  # weights re-streamed once per row tile
    cost = pl.CostEstimate(
        flops=4 * n_rows * d_model * d_ff,
        transcendentals=n_rows,  # rsqrt per row
        bytes_accessed=(2 * n_rows * d_model * x_itemsize   # x in, out
                        + w_pass_bytes
                        + (3 * d_model + d_ff) * 4),         # gamma/beta/biases
    )

    out2 = pl.pallas_call(
        _ffn_block_kernel,
        out_shape=jax.ShapeDtypeStruct((n_rows, d_model), x.dtype),
        grid_spec=pltpu.PrefetchScalarGridSpec(
            num_scalar_prefetch=0,
            grid=grid,
            in_specs=in_specs,
            out_specs=row_spec,
            scratch_shapes=[
                pltpu.VMEM((tr, d_model), w1.dtype),     # normalized x (matmul dtype)
                pltpu.VMEM((tr, d_model), jnp.float32),  # residual-seeded accumulator
            ],
        ),
        compiler_params=pltpu.CompilerParams(
            # Rows are embarrassingly parallel (megacore on v7x); the d_ff
            # chunk axis is a reduction -> arbitrary.
            dimension_semantics=("parallel", "arbitrary"),
            vmem_limit_bytes=vmem_limit,
        ),
        cost_estimate=cost,
    )(x2, gamma2, beta2, w1, b1_2, w2, b2_2)

    return out2.reshape(batch, seq, d_model)


def reference(x, gamma, beta, w1, b1, w2, b2, compute_dtype=jnp.bfloat16):
    """Pure-JAX reference with the same bf16-matmul / f32-accumulate recipe."""
    xf = x.astype(jnp.float32)
    mean = jnp.mean(xf, axis=-1, keepdims=True)
    var = jnp.mean(jnp.square(xf - mean), axis=-1, keepdims=True)
    xn = (xf - mean) * jax.lax.rsqrt(var + LN_EPS) * gamma + beta
    h = jnp.dot(xn.astype(compute_dtype), w1.astype(compute_dtype),
                preferred_element_type=jnp.float32) + b1
    h = jnp.maximum(h, 0.0)
    y = jnp.dot(h.astype(compute_dtype), w2.astype(compute_dtype),
                preferred_element_type=jnp.float32) + b2
    return (y + xf).astype(x.dtype)


if __name__ == "__main__":
    # Small config consistent with the module: d_model=32, d_ff=64.
    batch, seq, d_model, d_ff = 2, 8, 32, 64

    key = jax.random.PRNGKey(0)
    kx, kw1, kb1, kw2, kb2 = jax.random.split(key, 5)

    x = jax.random.normal(kx, (batch, seq, d_model), dtype=jnp.float32)

    # Deterministic parameter init (LayerNorm defaults: gamma=1, beta=0).
    gamma = jnp.ones((d_model,), jnp.float32)
    beta = jnp.zeros((d_model,), jnp.float32)
    w1 = jax.random.normal(kw1, (d_model, d_ff), jnp.float32) * (1.0 / d_model ** 0.5)
    b1 = jax.random.normal(kb1, (d_ff,), jnp.float32) * 0.01
    w2 = jax.random.normal(kw2, (d_ff, d_model), jnp.float32) * (1.0 / d_ff ** 0.5)
    b2 = jax.random.normal(kb2, (d_model,), jnp.float32) * 0.01

    # Cast weights to the matmul dtype ONCE, outside the jitted wrapper
    # (no per-call f32 -> bf16 weight-cast HBM traffic).
    compute_dtype = jnp.bfloat16
    w1c = jax.block_until_ready(w1.astype(compute_dtype))
    w2c = jax.block_until_ready(w2.astype(compute_dtype))

    out = feed_forward_block(x, gamma, beta, w1c, b1, w2c, b2)
    out = jax.block_until_ready(out)

    ref = reference(x, gamma, beta, w1, b1, w2, b2, compute_dtype=compute_dtype)
    assert out.shape == x.shape and out.dtype == x.dtype
    assert jnp.allclose(out, ref, atol=2e-2, rtol=2e-2), "mismatch vs reference"

    print("KERNEL_OK")
</pallas_src>

<mosaic_0001>
module attributes {stable_mosaic.version = 11 : i64} {
  func.func @_ffn_block_kernel(%arg0: i32, %arg1: i32, %arg2: memref<16x32xf32, #tpu.memory_space<vmem>>, %arg3: memref<1x32xf32, #tpu.memory_space<vmem>>, %arg4: memref<1x32xf32, #tpu.memory_space<vmem>>, %arg5: memref<32x64xbf16, #tpu.memory_space<vmem>>, %arg6: memref<1x64xf32, #tpu.memory_space<vmem>>, %arg7: memref<64x32xbf16, #tpu.memory_space<vmem>>, %arg8: memref<1x32xf32, #tpu.memory_space<vmem>>, %arg9: memref<16x32xf32, #tpu.memory_space<vmem>>, %arg10: memref<16x32xbf16, #tpu.memory_space<vmem>>, %arg11: memref<16x32xf32, #tpu.memory_space<vmem>>) attributes {dimension_semantics = [#tpu.dimension_semantics<parallel>, #tpu.dimension_semantics<arbitrary>], iteration_bounds = array<i64: 1, 1>, scalar_prefetch = 0 : i64, scratch_operands = 2 : i64, tpu.core_type = #tpu.core_type<tc>, window_params = [{transform_indices = @transform_0, window_bounds = array<i64: 16, 32>}, {pipeline_mode = #tpu.pipeline_mode<synchronous>, transform_indices = @transform_1, window_bounds = array<i64: 1, 32>}, {pipeline_mode = #tpu.pipeline_mode<synchronous>, transform_indices = @transform_2, window_bounds = array<i64: 1, 32>}, {pipeline_mode = #tpu.pipeline_mode<synchronous>, transform_indices = @transform_3, window_bounds = array<i64: 32, 64>}, {pipeline_mode = #tpu.pipeline_mode<synchronous>, transform_indices = @transform_4, window_bounds = array<i64: 1, 64>}, {pipeline_mode = #tpu.pipeline_mode<synchronous>, transform_indices = @transform_5, window_bounds = array<i64: 64, 32>}, {pipeline_mode = #tpu.pipeline_mode<synchronous>, transform_indices = @transform_6, window_bounds = array<i64: 1, 32>}, {transform_indices = @transform_7, window_bounds = array<i64: 16, 32>}]} {
    %c0_i32 = arith.constant 0 : i32
    %0 = arith.cmpi eq, %arg1, %c0_i32 : i32
    %1 = arith.extui %0 : i1 to i32
    %c0_i32_0 = arith.constant 0 : i32
    %2 = arith.cmpi ne, %1, %c0_i32_0 : i32
    scf.if %2 {
      %c0_16 = arith.constant 0 : index
      %c0_17 = arith.constant 0 : index
      %20 = vector.load %arg2[%c0_16, %c0_17] : memref<16x32xf32, #tpu.memory_space<vmem>>, vector<16x32xf32>
      %cst_18 = arith.constant dense<0.000000e+00> : vector<16xf32>
      %21 = vector.multi_reduction <add>, %20, %cst_18 [1] : vector<16x32xf32> to vector<16xf32>
      %22 = vector.shape_cast %21 : vector<16xf32> to vector<16x1xf32>
      %cst_19 = arith.constant 3.125000e-02 : f32
      %23 = vector.broadcast %cst_19 : f32 to vector<16x1xf32>
      %24 = arith.mulf %22, %23 : vector<16x1xf32>
      %25 = vector.broadcast %24 : vector<16x1xf32> to vector<16x32xf32>
      %26 = arith.subf %20, %25 : vector<16x32xf32>
      %27 = arith.mulf %26, %26 : vector<16x32xf32>
      %cst_20 = arith.constant dense<0.000000e+00> : vector<16xf32>
      %28 = vector.multi_reduction <add>, %27, %cst_20 [1] : vector<16x32xf32> to vector<16xf32>
      %29 = vector.shape_cast %28 : vector<16xf32> to vector<16x1xf32>
      %cst_21 = arith.constant 3.125000e-02 : f32
      %30 = vector.broadcast %cst_21 : f32 to vector<16x1xf32>
      %31 = arith.mulf %29, %30 : vector<16x1xf32>
      %cst_22 = arith.constant 9.99999974E-6 : f32
      %32 = vector.broadcast %cst_22 : f32 to vector<16x1xf32>
      %33 = arith.addf %31, %32 : vector<16x1xf32>
      %34 = math.rsqrt %33 : vector<16x1xf32>
      %35 = vector.broadcast %34 : vector<16x1xf32> to vector<16x32xf32>
      %36 = arith.mulf %26, %35 : vector<16x32xf32>
      %c0_23 = arith.constant 0 : index
      %c0_24 = arith.constant 0 : index
      %37 = vector.load %arg3[%c0_23, %c0_24] : memref<1x32xf32, #tpu.memory_space<vmem>>, vector<1x32xf32>
      %38 = vector.broadcast %37 : vector<1x32xf32> to vector<16x32xf32>
      %39 = arith.mulf %36, %38 : vector<16x32xf32>
      %c0_25 = arith.constant 0 : index
      %c0_26 = arith.constant 0 : index
      %40 = vector.load %arg4[%c0_25, %c0_26] : memref<1x32xf32, #tpu.memory_space<vmem>>, vector<1x32xf32>
      %41 = vector.broadcast %40 : vector<1x32xf32> to vector<16x32xf32>
      %42 = arith.addf %39, %41 : vector<16x32xf32>
      %43 = arith.truncf %42 : vector<16x32xf32> to vector<16x32xbf16>
      %c0_27 = arith.constant 0 : index
      %c0_28 = arith.constant 0 : index
      %44 = vector.load %arg10[%c0_27, %c0_28] : memref<16x32xbf16, #tpu.memory_space<vmem>>, vector<16x32xbf16>
      tpu.vector_store %arg10[%c0_27, %c0_28], %43 {strides = array<i32>} : memref<16x32xbf16, #tpu.memory_space<vmem>>, vector<16x32xbf16>,
      %c0_29 = arith.constant 0 : index
      %c0_30 = arith.constant 0 : index
      %45 = vector.load %arg11[%c0_29, %c0_30] : memref<16x32xf32, #tpu.memory_space<vmem>>, vector<16x32xf32>
      tpu.vector_store %arg11[%c0_29, %c0_30], %20 {strides = array<i32>} : memref<16x32xf32, #tpu.memory_space<vmem>>, vector<16x32xf32>,
    } else {
    }
    %c0 = arith.constant 0 : index
    %c0_1 = arith.constant 0 : index
    %3 = vector.load %arg10[%c0, %c0_1] : memref<16x32xbf16, #tpu.memory_space<vmem>>, vector<16x32xbf16>
    %c0_2 = arith.constant 0 : index
    %c0_3 = arith.constant 0 : index
    %4 = vector.load %arg5[%c0_2, %c0_3] : memref<32x64xbf16, #tpu.memory_space<vmem>>, vector<32x64xbf16>
    %cst = arith.constant dense<0.000000e+00> : vector<16x64xf32>
    %5 = tpu.matmul %3, %4, %cst {dimension_numbers = #tpu.dot_dimension_numbers<[1], [0], [0], [1], [0, 0, 1, 1], [], []>} : vector<16x32xbf16>, vector<32x64xbf16>, vector<16x64xf32> -> vector<16x64xf32>
    %c0_4 = arith.constant 0 : index
    %c0_5 = arith.constant 0 : index
    %6 = vector.load %arg6[%c0_4, %c0_5] : memref<1x64xf32, #tpu.memory_space<vmem>>, vector<1x64xf32>
    %7 = vector.broadcast %6 : vector<1x64xf32> to vector<16x64xf32>
    %8 = arith.addf %5, %7 : vector<16x64xf32>
    %cst_6 = arith.constant 0.000000e+00 : f32
    %9 = vector.broadcast %cst_6 : f32 to vector<16x64xf32>
    %10 = arith.maximumf %8, %9 : vector<16x64xf32>
    %c0_7 = arith.constant 0 : index
    %c0_8 = arith.constant 0 : index
    %11 = vector.load %arg11[%c0_7, %c0_8] : memref<16x32xf32, #tpu.memory_space<vmem>>, vector<16x32xf32>
    %12 = arith.truncf %10 : vector<16x64xf32> to vector<16x64xbf16>
    %c0_9 = arith.constant 0 : index
    %c0_10 = arith.constant 0 : index
    %13 = vector.load %arg7[%c0_9, %c0_10] : memref<64x32xbf16, #tpu.memory_space<vmem>>, vector<64x32xbf16>
    %cst_11 = arith.constant dense<0.000000e+00> : vector<16x32xf32>
    %14 = tpu.matmul %12, %13, %cst_11 {dimension_numbers = #tpu.dot_dimension_numbers<[1], [0], [0], [1], [0, 0, 1, 1], [], []>} : vector<16x64xbf16>, vector<64x32xbf16>, vector<16x32xf32> -> vector<16x32xf32>
    %15 = arith.addf %11, %14 : vector<16x32xf32>
    %c0_12 = arith.constant 0 : index
    %c0_13 = arith.constant 0 : index
    %16 = vector.load %arg11[%c0_12, %c0_13] : memref<16x32xf32, #tpu.memory_space<vmem>>, vector<16x32xf32>
    tpu.vector_store %arg11[%c0_12, %c0_13], %15 {strides = array<i32>} : memref<16x32xf32, #tpu.memory_space<vmem>>, vector<16x32xf32>,
    %c0_i32_14 = arith.constant 0 : i32
    %17 = arith.cmpi eq, %arg1, %c0_i32_14 : i32
    %18 = arith.extui %17 : i1 to i32
    %c0_i32_15 = arith.constant 0 : i32
    %19 = arith.cmpi ne, %18, %c0_i32_15 : i32
    scf.if %19 {
      %c0_16 = arith.constant 0 : index
      %c0_17 = arith.constant 0 : index
      %20 = vector.load %arg11[%c0_16, %c0_17] : memref<16x32xf32, #tpu.memory_space<vmem>>, vector<16x32xf32>
      %c0_18 = arith.constant 0 : index
      %c0_19 = arith.constant 0 : index
      %21 = vector.load %arg8[%c0_18, %c0_19] : memref<1x32xf32, #tpu.memory_space<vmem>>, vector<1x32xf32>
      %22 = vector.broadcast %21 : vector<1x32xf32> to vector<16x32xf32>
      %23 = arith.addf %20, %22 : vector<16x32xf32>
      %c0_20 = arith.constant 0 : index
      %c0_21 = arith.constant 0 : index
      %24 = vector.load %arg9[%c0_20, %c0_21] : memref<16x32xf32, #tpu.memory_space<vmem>>, vector<16x32xf32>
      tpu.vector_store %arg9[%c0_20, %c0_21], %23 {strides = array<i32>} : memref<16x32xf32, #tpu.memory_space<vmem>>, vector<16x32xf32>,
    } else {
    }
    return
  }
  func.func @transform_0(%arg0: i32, %arg1: i32) -> (i32, i32) {
    %c0_i32 = arith.constant 0 : i32
    %c0_i32_0 = arith.constant 0 : i32
    return %arg0, %c0_i32 : i32, i32
  }
  func.func @transform_1(%arg0: i32, %arg1: i32) -> (i32, i32) {
    %c0_i32 = arith.constant 0 : i32
    %c0_i32_0 = arith.constant 0 : i32
    %c0_i32_1 = arith.constant 0 : i32
    return %c0_i32, %c0_i32_0 : i32, i32
  }
  func.func @transform_2(%arg0: i32, %arg1: i32) -> (i32, i32) {
    %c0_i32 = arith.constant 0 : i32
    %c0_i32_0 = arith.constant 0 : i32
    %c0_i32_1 = arith.constant 0 : i32
    return %c0_i32, %c0_i32_0 : i32, i32
  }
  func.func @transform_3(%arg0: i32, %arg1: i32) -> (i32, i32) {
    %c0_i32 = arith.constant 0 : i32
    %c0_i32_0 = arith.constant 0 : i32
    return %c0_i32, %arg1 : i32, i32
  }
  func.func @transform_4(%arg0: i32, %arg1: i32) -> (i32, i32) {
    %c0_i32 = arith.constant 0 : i32
    %c0_i32_0 = arith.constant 0 : i32
    return %c0_i32, %arg1 : i32, i32
  }
  func.func @transform_5(%arg0: i32, %arg1: i32) -> (i32, i32) {
    %c0_i32 = arith.constant 0 : i32
    %c0_i32_0 = arith.constant 0 : i32
    return %arg1, %c0_i32 : i32, i32
  }
  func.func @transform_6(%arg0: i32, %arg1: i32) -> (i32, i32) {
    %c0_i32 = arith.constant 0 : i32
    %c0_i32_0 = arith.constant 0 : i32
    %c0_i32_1 = arith.constant 0 : i32
    return %c0_i32, %c0_i32_0 : i32, i32
  }
  func.func @transform_7(%arg0: i32, %arg1: i32) -> (i32, i32) {
    %c0_i32 = arith.constant 0 : i32
    %c0_i32_0 = arith.constant 0 : i32
    return %arg0, %c0_i32 : i32, i32
  }
}

</mosaic_0001>

<bundles_post_ra>
// kernel: feed_forward_block.1
= control target key start
LH: loop header
LB: loop body
LE: loop exit
PB: predicated region body
PF: predicated region fallthrough
CT: control target
= control target key end

     0   :  { %vm34_vm0 = vcmask 261120   ;;  %s454_s0 = inlined_call_operand.vmem [shape: f32[16,32], index: 0, kind: input, shape index: {}]   ;;  %s455_s1 = inlined_call_operand.vmem [shape: f32[1,32], index: 1, kind: input, shape index: {}]   ;;  %s456_s2 = inlined_call_operand.vmem [shape: f32[1,32], index: 2, kind: input, shape index: {}]   ;;  %s457_s3 = inlined_call_operand.vmem [shape: bf16[32,64], index: 3, kind: input, shape index: {}]   ;;  %s458_s4 = inlined_call_operand.vmem [shape: f32[1,64], index: 4, kind: input, shape index: {}]   ;;  %s459_s5 = inlined_call_operand.vmem [shape: bf16[64,32], index: 5, kind: input, shape index: {}]   ;;  %s460_s6 = inlined_call_operand.vmem [shape: f32[1,32], index: 6, kind: input, shape index: {}]   ;;  %s461_s7 = inlined_call_operand.hbm [shape: f32[16,32], index: 7, kind: output, shape index: {}]  }
   0x1   :  { %v32_v0 = vld [vmem:[%s454_s0] sm:$0xff]  ;;  %v33_v1 = vld [vmem:[%s454_s0 + $0x8] sm:$0xff] }
   0x2   :  { %v35_v2 = vsel %vm34_vm0, %v32_v0, 0.0  ;;  %81 = vst.msk [vmem:[#allocation3] sm:$0xff] %vm34_vm0, %v32_v0  ;;  %v38_v3 = vsel %vm34_vm0, %v33_v1, 0.0  ;;  %82 = vst.msk [vmem:[#allocation3 + $0x8] sm:$0xff] %vm34_vm0, %v33_v1 }
   0x3   :  { %36 = vadd.xlane.f32.xlu0 %v35_v2 }
   0x4   :  { %12 = vsyncpa [#allocation5], 0  ;;  %v315_v14 = vld [vmem:[%s457_s3] sm:$0xff]   ;;  %v349_v15 = vmov 0.0   ;;  %v316_v16 = vld [vmem:[%s457_s3 + $0x8] sm:$0xff]   ;;  %vm350_vm1 = vmmov 0  }
   0x5   :  { %290 = vmatprep.subr.bf16.mxu0 %v349_v15  ;;  %298 = vmatprep.subr.bf16.mxu1 %v349_v15  ;;  %v317_v17 = vld [vmem:[%s459_s5] sm:$0xff]   ;;  %v318_v18 = vld [vmem:[%s459_s5 + $0x8] sm:$0xff]   ;;  %v319_v37 = vld [vmem:[%s459_s5 + $0x10] sm:$0xff]   ;;  %vm189_vm2 = vcmask 523264   ;;  %s351_s19 = smov [#allocation4]  }
   0x6   :  { %291 = vmatpush3.bf16.msra.mxu0 %v315_v14  ;;  %294 = vmatprep.mubr.msk.bf16.mxu0 %vm350_vm1, %v349_v15  ;;  %v270_v27 = vld [vmem:[%s455_s1] ss:$0 sm:$0xff]  ;;  %v320_v38 = vld [vmem:[%s459_s5 + $0x18] sm:$0xff]   ;;  %s259_s20 = sshll.u32 %s351_s19, 4  ;;  %s260_s20 = int_to_ptr.vmem [resolvable:$true] %s259_s20 }
   0x7   :  { %39 = vadd.xlane.f32.xlu0 %v38_v3  ;;  %292 = vmatprep.subr.bf16.mxu0 %v349_v15  ;;  %v271_v31 = vld [vmem:[%s456_s2] ss:$0 sm:$0xff]  ;;  %s325_s21 = scalar_lea.vmem %s260_s20, 256  ;;  %p330_p1 = scmp.lt.s32.totalorder %s260_s20, %s260_s20 }
   0x8   :  { %306 = vmatprep.mubr.msk.bf16.mxu1 %vm350_vm1, %v349_v15  ;;  %299 = vmatpush3.bf16.msra.mxu1 %v317_v17  ;;  %v272_v39 = vld [vmem:[%s458_s4] ss:$0 sm:$0xff]  ;;  %p326_p0 = scmp.ne.s32.totalorder %s260_s20, %s325_s21  ;;  %p331_p2 = scmp.lt.s32.totalorder %s325_s21, %s325_s21 }
   0x9   :  { %300 = vmatprep.subr.bf16.mxu1 %v349_v15  ;;  %v154_v49 = vld [vmem:[#allocation3] sm:$0xff]  ;;  %v155_v51 = vld [vmem:[#allocation3 + $0x8] sm:$0xff]  ;;  %v281_v57 = vld [vmem:[%s460_s6] ss:$0 sm:$0xff] }
   0xa   :  { %293 = vmatpush3.bf16.msra.mxu0 %v316_v16  ;;  %p332_p3 = por %p331_p2, %p330_p1 }
   0xc   :  { %301 = vmatpush3.bf16.msra.mxu1 %v318_v18  ;;  %p333_p4 = pnand %p332_p3, %p326_p0 }
   0xd   :  { %302 = vmatprep.subr.bf16.mxu1 %v349_v15 }
  0x10   :  { %303 = vmatpush3.bf16.msra.mxu1 %v319_v37 }
  0x11   :  { %304 = vmatprep.subr.bf16.mxu1 %v349_v15 }
  0x14   :  { %305 = vmatpush3.bf16.msra.mxu1 %v320_v38 }
  0x90   :  { %v37_v4 = vpop.xlane.xlu0 %36 }
  0x91   :  { %v41_v5 = vmul.f32 0.03125, %v37_v4 }
  0x93   :  { %v43_v6 = vsub.f32 %v32_v0, %v41_v5 }
  0x94   :  { %v40_v7 = vpop.xlane.xlu0 %39 }
  0x95   :  { %v42_v8 = vmul.f32 0.03125, %v40_v7  ;;  %v45_v9 = vmul.f32 %v43_v6, %v43_v6 }
  0x97   :  { %v44_v10 = vsub.f32 %v33_v1, %v42_v8  ;;  %v47_v11 = vsel %vm34_vm0, %v45_v9, 0.0 }
  0x98   :  { %48 = vadd.xlane.f32.xlu1 %v47_v11 }
  0x99   :  { %v46_v12 = vmul.f32 %v44_v10, %v44_v10 }
  0x9b   :  { %v50_v13 = vsel %vm34_vm0, %v46_v12, 0.0 }
  0x9c   :  { %51 = vadd.xlane.f32.xlu1 %v50_v13 }
 0x125   :  { %v49_v19 = vpop.xlane.xlu1 %48 }
 0x126   :  { %v53_v20 = vmul.f32 0.03125, %v49_v19 }
 0x128   :  { %v55_v21 = vadd.f32 1e-05, %v53_v20 }
 0x129   :  { %v52_v22 = vpop.xlane.xlu1 %51 }
 0x12a   :  { %321 = vrsqrt.f32 %v55_v21  ;;  %v54_v23 = vmul.f32 0.03125, %v52_v22 }
 0x12c   :  { %v56_v24 = vadd.f32 1e-05, %v54_v23 }
 0x12e   :  { %323 = vrsqrt.f32 %v56_v24 }
 0x134   :  { %v322_v25 = vpop.eup %321 }
 0x135   :  { %v59_v26 = vmul.f32 %v322_v25, %v43_v6 }
 0x137   :  { %v68_v29 = vmul.f32 %v270_v27, %v59_v26 }
 0x138   :  { %v324_v28 = vpop.eup %323 }
 0x139   :  { %v60_v30 = vmul.f32 %v324_v28, %v44_v10  ;;  %v77_v33 = vadd.f32 %v271_v31, %v68_v29 }
 0x13b   :  { %v69_v32 = vmul.f32 %v270_v27, %v60_v30 }
 0x13d   :  { %v78_v34 = vadd.f32 %v271_v31, %v69_v32 }
 0x13f   :  { %v79_v35 = vpack.c.bf16 %v78_v34, %v77_v33 }
 0x141   :  { %80 = vst.msk [vmem:[#allocation2] sm:$0xff] %vm34_vm0, %v79_v35 }
 0x148   :  { %v83_v36 = vld [vmem:[#allocation2] sm:$0xff] }
 0x149   :  { %295 = vmatmul.mubr.msk.bf16.vlgmr.msra.gmra.mrb[0].mxu0 %vm34_vm0, %v83_v36 }
 0x21c   :  { %v145_v40 = vpop.f32.mrb[0].mxu0 }
 0x21d   :  { %v146_v41 = vadd.f32 %v272_v39, %v145_v40  ;;  %v296_v42 = vpop.f32.mrb[1].mxu0 }
 0x21e   :  { %v148_v43 = vpop.f32.mrb[2].mxu0 }
 0x21f   :  { %v149_v44 = vadd.f32 %v272_v39, %v148_v43  ;;  %v297_v45 = vpop.f32.mrb[3].mxu0  ;;  %v152_v46 = vmax.f32 %v146_v41, 0.0 }
 0x221   :  { %v153_v47 = vmax.f32 %v149_v44, 0.0 }
 0x223   :  { %v156_v48 = vpack.c.bf16 %v153_v47, %v152_v46 }
 0x225   :  { %307 = vmatmul.mubr.msk.bf16.vlgmr.msra.gmra.mrb[0].mxu1 %vm189_vm2, %v156_v48 }
 0x2f8   :  { %v227_v50 = vpop.f32.mrb[0].mxu1 }
 0x2f9   :  { %v234_v52 = vadd.f32 %v227_v50, %v154_v49  ;;  %v308_v53 = vpop.f32.mrb[1].mxu1 }
 0x2fa   :  { %v230_v54 = vpop.f32.mrb[2].mxu1 }
 0x2fb   :  { %236 = vst.msk [vmem:[#allocation3] sm:$0xff] %vm34_vm0, %v234_v52  ;;  %v235_v55 = vadd.f32 %v230_v54, %v155_v51  ;;  %v309_v56 = vpop.f32.mrb[3].mxu1 }
 0x2fd   :  { %237 = vst.msk [vmem:[#allocation3 + $0x8] sm:$0xff] %vm34_vm0, %v235_v55 }
 0x302   :  { %v241_v58 = vld [vmem:[#allocation3] sm:$0xff] }
 0x303   :  { %v250_v59 = vadd.f32 %v281_v57, %v241_v58 }
 0x304   :  { %v242_v60 = vld [vmem:[#allocation3 + $0x8] sm:$0xff] }
 0x305   :  { %v251_v61 = vadd.f32 %v281_v57, %v242_v60  ;;  %252 = vst.msk [vmem:[#allocation4] sm:$0xff] %vm34_vm0, %v250_v59 }
 0x307   :  { %253 = vst.msk [vmem:[#allocation4 + $0x8] sm:$0xff] %vm34_vm0, %v251_v61 }
 0x308   :  { %336 = shalt.err (!%p333_p4)
}
 0x309   :  { %s337_s23 = scalar_lea.hbm %s461_s7, 256 }
 0x30a   :  { %p338_p5 = scmp.ne.s32.totalorder %s461_s7, %s337_s23  ;;  %p341_p6 = scmp.lt.u32.totalorder %s337_s23, %s461_s7 }
 0x30c   :  { %p343_p7 = pnand %p341_p6, %p338_p5 }
 0x30e   :  { %346 = shalt.err (!%p343_p7)
}
 0x30f   :  { %s352_s0 = smov 128   ;;  %s353_s28 = smov 8  }
 0x310   :  { %265 = dma.vmem_to_hbm [thread:$0]  %s260_s20, 256, %s461_s7, [#allocation5], %s352_s0, %s352_s0, %s353_s28  }
 0x311   :  { %347 = dma.done.wait [#allocation5], 256  }
 0x312   :  { %348 = vsyncadd [#allocation5], 4294967040 }
 0x313   :  { %269 = vsyncpa [#allocation5], 1 }

</bundles_post_ra>
